<compile_context>
chip_gen: v5e
topology: v5e:2x2
jax: 0.10.0
libtpu: 0.0.40
codegen_flags: <defaults>
</compile_context>

<pallas_src>
import functools

import jax
import jax.numpy as jnp
from jax.experimental import pallas as pl
from jax.experimental.pallas import tpu as pltpu


def _round_up(x, m):
    return ((x + m - 1) // m) * m


def _ffn_kernel_single(x_ref, w1_ref, b1_ref, w2_ref, b2_ref, o_ref):
    """Whole hidden dim in one tile: fused MXU -> tanh (EUP) -> MXU."""
    x = x_ref[...]
    h = jnp.dot(x, w1_ref[...], preferred_element_type=jnp.float32)
    h = jnp.tanh(h + b1_ref[...])                       # b1 broadcasts over rows
    y = jnp.dot(h.astype(x.dtype), w2_ref[...],
                preferred_element_type=jnp.float32)
    o_ref[...] = (y + b2_ref[...]).astype(o_ref.dtype)


def _ffn_kernel_tiled(x_ref, w1_ref, b1_ref, w2_ref, b2_ref, o_ref, acc_ref):
    """Hidden dim tiled along grid axis 1; f32 accumulator in VMEM scratch."""
    h_idx = pl.program_id(1)

    @pl.when(h_idx == 0)
    def _():
        # Fold b2 into the accumulator init (saves the epilogue add).
        acc_ref[...] = jnp.broadcast_to(
            b2_ref[...].astype(jnp.float32), acc_ref.shape)

    x = x_ref[...]
    # First layer on this hidden tile: (tile_m, dim) @ (dim, tile_h).
    h = jnp.dot(x, w1_ref[...], preferred_element_type=jnp.float32)
    h = jnp.tanh(h + b1_ref[...])
    # Second layer partial sum: (tile_m, tile_h) @ (tile_h, dim), f32 accum.
    acc_ref[...] += jnp.dot(h.astype(x.dtype), w2_ref[...],
                            preferred_element_type=jnp.float32)

    @pl.when(h_idx == pl.num_programs(1) - 1)
    def _():
        o_ref[...] = acc_ref[...].astype(o_ref.dtype)


def feed_forward_pallas(x, w1, b1, w2, b2, *, tile_m=256, tile_h=512):
    """x: (..., dim). w1: (dim, hidden), b1: (hidden,), w2: (hidden, dim), b2: (dim,)."""
    orig_shape = x.shape
    dim = orig_shape[-1]
    hidden = w1.shape[1]
    x2d = x.reshape(-1, dim)
    M = x2d.shape[0]

    itemsize = jnp.dtype(x.dtype).itemsize
    sublane = 8 if itemsize >= 4 else 16   # bf16 packs 16 rows per sublane tile

    # Lane-dense padding of the feature dims (multiples of 128).
    dim_p = _round_up(dim, 128)
    # Effective tiles: never larger than the (padded) problem.
    tile_m_eff = min(_round_up(tile_m, sublane), _round_up(M, sublane))
    tile_h_eff = min(_round_up(tile_h, 128), _round_up(hidden, 128))
    M_p = _round_up(M, tile_m_eff)
    hidden_p = _round_up(hidden, tile_h_eff)

    # Zero-pad (no-op copies when already aligned).
    x_p = jnp.pad(x2d, ((0, M_p - M), (0, dim_p - dim)))
    w1_p = jnp.pad(w1, ((0, dim_p - dim), (0, hidden_p - hidden)))
    b1_p = jnp.pad(b1, (0, hidden_p - hidden)).reshape(1, hidden_p)
    w2_p = jnp.pad(w2, ((0, hidden_p - hidden), (0, dim_p - dim)))
    b2_p = jnp.pad(b2, (0, dim_p - dim)).reshape(1, dim_p)

    n_m = M_p // tile_m_eff
    n_h = hidden_p // tile_h_eff
    single_pass = (n_h == 1)

    # Explicit VMEM budget from the tile footprint (2x for double buffering),
    # clamped to stay within v7x's 64 MiB/TC physical VMEM.
    footprint = (
        2 * tile_m_eff * dim_p * itemsize          # x tiles
        + 2 * tile_m_eff * dim_p * itemsize        # out tiles
        + 2 * dim_p * tile_h_eff * itemsize        # W1 tiles
        + 2 * 8 * tile_h_eff * itemsize            # b1 (sublane-padded)
        + 2 * tile_h_eff * dim_p * itemsize        # W2 tiles
        + 2 * 8 * dim_p * itemsize                 # b2
        + (0 if single_pass else tile_m_eff * dim_p * 4)  # f32 accumulator
    )
    vmem_limit = int(min(64 << 20, max(int(footprint * 1.5) + (4 << 20), 32 << 20)))

    if single_pass:
        grid_spec = pltpu.PrefetchScalarGridSpec(
            num_scalar_prefetch=0,
            grid=(n_m,),
            in_specs=[
                pl.BlockSpec((tile_m_eff, dim_p), lambda i: (i, 0)),    # x
                pl.BlockSpec((dim_p, hidden_p), lambda i: (0, 0)),      # W1
                pl.BlockSpec((1, hidden_p), lambda i: (0, 0)),          # b1
                pl.BlockSpec((hidden_p, dim_p), lambda i: (0, 0)),      # W2
                pl.BlockSpec((1, dim_p), lambda i: (0, 0)),             # b2
            ],
            out_specs=pl.BlockSpec((tile_m_eff, dim_p), lambda i: (i, 0)),
        )
        kernel = _ffn_kernel_single
        dim_sem = ("parallel",)
    else:
        grid_spec = pltpu.PrefetchScalarGridSpec(
            num_scalar_prefetch=0,
            grid=(n_m, n_h),
            in_specs=[
                pl.BlockSpec((tile_m_eff, dim_p), lambda i, h: (i, 0)),   # x
                pl.BlockSpec((dim_p, tile_h_eff), lambda i, h: (0, h)),   # W1 tile
                pl.BlockSpec((1, tile_h_eff), lambda i, h: (0, h)),       # b1 tile
                pl.BlockSpec((tile_h_eff, dim_p), lambda i, h: (h, 0)),   # W2 tile
                pl.BlockSpec((1, dim_p), lambda i, h: (0, 0)),            # b2
            ],
            out_specs=pl.BlockSpec((tile_m_eff, dim_p), lambda i, h: (i, 0)),
            scratch_shapes=[pltpu.VMEM((tile_m_eff, dim_p), jnp.float32)],
        )
        kernel = _ffn_kernel_tiled
        dim_sem = ("parallel", "arbitrary")

    out = pl.pallas_call(
        kernel,
        out_shape=jax.ShapeDtypeStruct((M_p, dim_p), x.dtype),
        grid_spec=grid_spec,
        compiler_params=pltpu.CompilerParams(
            dimension_semantics=dim_sem,
            vmem_limit_bytes=vmem_limit,
        ),
    )(x_p, w1_p, b1_p, w2_p, b2_p)

    return out[:M, :dim].reshape(orig_shape)


def init_feed_forward_params(key, dim, hidden_dim, dtype=jnp.float32):
    """Deterministic init mirroring torch.nn.Linear default U(-1/sqrt(fan_in), 1/sqrt(fan_in))."""
    k1, k2, k3, k4 = jax.random.split(key, 4)
    bound1 = 1.0 / (dim ** 0.5)
    bound2 = 1.0 / (hidden_dim ** 0.5)
    # Stored as (in, out) so the kernel computes x @ W (== x @ W_torch.T).
    w1 = jax.random.uniform(k1, (dim, hidden_dim), dtype, minval=-bound1, maxval=bound1)
    b1 = jax.random.uniform(k2, (hidden_dim,), dtype, minval=-bound1, maxval=bound1)
    w2 = jax.random.uniform(k3, (hidden_dim, dim), dtype, minval=-bound2, maxval=bound2)
    b2 = jax.random.uniform(k4, (dim,), dtype, minval=-bound2, maxval=bound2)
    return w1, b1, w2, b2


if __name__ == "__main__":
    key = jax.random.PRNGKey(0)
    k_x, k_p, k_x2, k_p2 = jax.random.split(key, 4)

    # Small shapes consistent with the module: (batch, seq, dim), hidden = 2*dim.
    batch, seq, dim, hidden_dim = 2, 8, 32, 64
    x = jax.random.normal(k_x, (batch, seq, dim), dtype=jnp.float32)
    w1, b1, w2, b2 = init_feed_forward_params(k_p, dim, hidden_dim)

    fn = jax.jit(functools.partial(feed_forward_pallas, tile_m=256, tile_h=512))
    y = fn(x, w1, b1, w2, b2)
    jax.block_until_ready(y)

    y_ref = jnp.tanh(x @ w1 + b1) @ w2 + b2
    assert y.shape == x.shape
    assert jnp.allclose(y, y_ref, atol=2e-5, rtol=1e-5), "mismatch vs reference (single-pass)"

    # Also exercise the hidden-tiled accumulator path.
    dim2, hidden2 = 128, 512
    x2 = jax.random.normal(k_x2, (batch, seq, dim2), dtype=jnp.float32)
    p2 = init_feed_forward_params(k_p2, dim2, hidden2)
    fn2 = jax.jit(functools.partial(feed_forward_pallas, tile_m=256, tile_h=256))
    y2 = fn2(x2, *p2)
    jax.block_until_ready(y2)
    y2_ref = jnp.tanh(x2 @ p2[0] + p2[1]) @ p2[2] + p2[3]
    assert jnp.allclose(y2, y2_ref, atol=2e-5, rtol=1e-5), "mismatch vs reference (tiled)"

    print("KERNEL_OK")
</pallas_src>

<mosaic_0001>
module attributes {stable_mosaic.version = 11 : i64} {
  func.func @_ffn_kernel_single(%arg0: i32, %arg1: memref<16x128xf32, #tpu.memory_space<vmem>>, %arg2: memref<128x128xf32, #tpu.memory_space<vmem>>, %arg3: memref<1x128xf32, #tpu.memory_space<vmem>>, %arg4: memref<128x128xf32, #tpu.memory_space<vmem>>, %arg5: memref<1x128xf32, #tpu.memory_space<vmem>>, %arg6: memref<16x128xf32, #tpu.memory_space<vmem>>) attributes {dimension_semantics = [#tpu.dimension_semantics<parallel>], iteration_bounds = array<i64: 1>, scalar_prefetch = 0 : i64, scratch_operands = 0 : i64, tpu.core_type = #tpu.core_type<tc>, window_params = [{transform_indices = @transform_0, window_bounds = array<i64: 16, 128>}, {pipeline_mode = #tpu.pipeline_mode<synchronous>, transform_indices = @transform_1, window_bounds = array<i64: 128, 128>}, {pipeline_mode = #tpu.pipeline_mode<synchronous>, transform_indices = @transform_2, window_bounds = array<i64: 1, 128>}, {pipeline_mode = #tpu.pipeline_mode<synchronous>, transform_indices = @transform_3, window_bounds = array<i64: 128, 128>}, {pipeline_mode = #tpu.pipeline_mode<synchronous>, transform_indices = @transform_4, window_bounds = array<i64: 1, 128>}, {transform_indices = @transform_5, window_bounds = array<i64: 16, 128>}]} {
    %c0 = arith.constant 0 : index
    %c0_0 = arith.constant 0 : index
    %0 = vector.load %arg1[%c0, %c0_0] : memref<16x128xf32, #tpu.memory_space<vmem>>, vector<16x128xf32>
    %c0_1 = arith.constant 0 : index
    %c0_2 = arith.constant 0 : index
    %1 = vector.load %arg2[%c0_1, %c0_2] : memref<128x128xf32, #tpu.memory_space<vmem>>, vector<128x128xf32>
    %cst = arith.constant dense<0.000000e+00> : vector<16x128xf32>
    %2 = tpu.matmul %0, %1, %cst {dimension_numbers = #tpu.dot_dimension_numbers<[1], [0], [0], [1], [0, 0, 1, 1], [], []>} : vector<16x128xf32>, vector<128x128xf32>, vector<16x128xf32> -> vector<16x128xf32>
    %c0_3 = arith.constant 0 : index
    %c0_4 = arith.constant 0 : index
    %3 = vector.load %arg3[%c0_3, %c0_4] : memref<1x128xf32, #tpu.memory_space<vmem>>, vector<1x128xf32>
    %4 = vector.broadcast %3 : vector<1x128xf32> to vector<16x128xf32>
    %5 = arith.addf %2, %4 : vector<16x128xf32>
    %6 = math.tanh %5 : vector<16x128xf32>
    %c0_5 = arith.constant 0 : index
    %c0_6 = arith.constant 0 : index
    %7 = vector.load %arg4[%c0_5, %c0_6] : memref<128x128xf32, #tpu.memory_space<vmem>>, vector<128x128xf32>
    %cst_7 = arith.constant dense<0.000000e+00> : vector<16x128xf32>
    %8 = tpu.matmul %6, %7, %cst_7 {dimension_numbers = #tpu.dot_dimension_numbers<[1], [0], [0], [1], [0, 0, 1, 1], [], []>} : vector<16x128xf32>, vector<128x128xf32>, vector<16x128xf32> -> vector<16x128xf32>
    %c0_8 = arith.constant 0 : index
    %c0_9 = arith.constant 0 : index
    %9 = vector.load %arg5[%c0_8, %c0_9] : memref<1x128xf32, #tpu.memory_space<vmem>>, vector<1x128xf32>
    %10 = vector.broadcast %9 : vector<1x128xf32> to vector<16x128xf32>
    %11 = arith.addf %8, %10 : vector<16x128xf32>
    %c0_10 = arith.constant 0 : index
    %c0_11 = arith.constant 0 : index
    %12 = vector.load %arg6[%c0_10, %c0_11] : memref<16x128xf32, #tpu.memory_space<vmem>>, vector<16x128xf32>
    tpu.vector_store %arg6[%c0_10, %c0_11], %11 {strides = array<i32>} : memref<16x128xf32, #tpu.memory_space<vmem>>, vector<16x128xf32>,
    return
  }
  func.func @transform_0(%arg0: i32) -> (i32, i32) {
    %c0_i32 = arith.constant 0 : i32
    %c0_i32_0 = arith.constant 0 : i32
    return %arg0, %c0_i32 : i32, i32
  }
  func.func @transform_1(%arg0: i32) -> (i32, i32) {
    %c0_i32 = arith.constant 0 : i32
    %c0_i32_0 = arith.constant 0 : i32
    %c0_i32_1 = arith.constant 0 : i32
    return %c0_i32, %c0_i32_0 : i32, i32
  }
  func.func @transform_2(%arg0: i32) -> (i32, i32) {
    %c0_i32 = arith.constant 0 : i32
    %c0_i32_0 = arith.constant 0 : i32
    %c0_i32_1 = arith.constant 0 : i32
    return %c0_i32, %c0_i32_0 : i32, i32
  }
  func.func @transform_3(%arg0: i32) -> (i32, i32) {
    %c0_i32 = arith.constant 0 : i32
    %c0_i32_0 = arith.constant 0 : i32
    %c0_i32_1 = arith.constant 0 : i32
    return %c0_i32, %c0_i32_0 : i32, i32
  }
  func.func @transform_4(%arg0: i32) -> (i32, i32) {
    %c0_i32 = arith.constant 0 : i32
    %c0_i32_0 = arith.constant 0 : i32
    %c0_i32_1 = arith.constant 0 : i32
    return %c0_i32, %c0_i32_0 : i32, i32
  }
  func.func @transform_5(%arg0: i32) -> (i32, i32) {
    %c0_i32 = arith.constant 0 : i32
    %c0_i32_0 = arith.constant 0 : i32
    return %arg0, %c0_i32 : i32, i32
  }
}

</mosaic_0001>

<bundles_post_ra>
// kernel: feed_forward_pallas.1
= control target key start
LH: loop header
LB: loop body
LE: loop exit
PB: predicated region body
PF: predicated region fallthrough
CT: control target
= control target key end

     0   :  { %s298_s1 = inlined_call_operand.vmem [shape: f32[128,128], index: 1, kind: input, shape index: {}]   ;;  %s299_s3 = inlined_call_operand.vmem [shape: f32[128,128], index: 3, kind: input, shape index: {}]   ;;  %s300_s2 = inlined_call_operand.vmem [shape: f32[1,128], index: 2, kind: input, shape index: {}]   ;;  %s301_s0 = inlined_call_operand.vmem [shape: f32[16,128], index: 0, kind: input, shape index: {}]   ;;  %s302_s4 = inlined_call_operand.vmem [shape: f32[1,128], index: 4, kind: input, shape index: {}]   ;;  %s303_s5 = inlined_call_operand.vmem [shape: f32[16,128], index: 5, kind: output, shape index: {}]  }
   0x1   :  { %v37_v0 = vld [vmem:[%s298_s1 + $0x78] sm:$0xff]  ;;  %v36_v1 = vld [vmem:[%s298_s1 + $0x70] sm:$0xff]  ;;  %v35_v2 = vld [vmem:[%s298_s1 + $0x68] sm:$0xff] }
   0x2   :  { %116 = vmatpush.msra.mxu2 %v37_v0  ;;  %42 = vmatpush.msra.mxu0 %v37_v0  ;;  %v34_v3 = vld [vmem:[%s298_s1 + $0x60] sm:$0xff]  ;;  %v33_v4 = vld [vmem:[%s298_s1 + $0x58] sm:$0xff]  ;;  %v81_v6 = vld [vmem:[%s299_s3 + $0x70] sm:$0xff] }
   0x3   :  { %v82_v5 = vld [vmem:[%s299_s3 + $0x78] sm:$0xff]  ;;  %v32_v7 = vld [vmem:[%s298_s1 + $0x50] sm:$0xff]  ;;  %v80_v8 = vld [vmem:[%s299_s3 + $0x68] sm:$0xff] }
   0x4   :  { %117 = vmatpush.msra.mxu2 %v36_v1  ;;  %43 = vmatpush.msra.mxu0 %v36_v1  ;;  %v31_v9 = vld [vmem:[%s298_s1 + $0x48] sm:$0xff]  ;;  %v79_v10 = vld [vmem:[%s299_s3 + $0x60] sm:$0xff]  ;;  %v78_v12 = vld [vmem:[%s299_s3 + $0x58] sm:$0xff] }
   0x5   :  { %132 = vmatpush.msra.mxu3 %v82_v5  ;;  %87 = vmatpush.msra.mxu1 %v82_v5  ;;  %v30_v11 = vld [vmem:[%s298_s1 + $0x40] sm:$0xff]  ;;  %v29_v13 = vld [vmem:[%s298_s1 + $0x38] sm:$0xff]  ;;  %v77_v14 = vld [vmem:[%s299_s3 + $0x50] sm:$0xff] }
   0x6   :  { %118 = vmatpush.msra.mxu2 %v35_v2  ;;  %44 = vmatpush.msra.mxu0 %v35_v2  ;;  %v28_v15 = vld [vmem:[%s298_s1 + $0x30] sm:$0xff]  ;;  %v76_v16 = vld [vmem:[%s299_s3 + $0x48] sm:$0xff]  ;;  %v75_v18 = vld [vmem:[%s299_s3 + $0x40] sm:$0xff] }
   0x7   :  { %133 = vmatpush.msra.mxu3 %v81_v6  ;;  %88 = vmatpush.msra.mxu1 %v81_v6  ;;  %v27_v17 = vld [vmem:[%s298_s1 + $0x28] sm:$0xff]  ;;  %v26_v19 = vld [vmem:[%s298_s1 + $0x20] sm:$0xff]  ;;  %v74_v20 = vld [vmem:[%s299_s3 + $0x38] sm:$0xff] }
   0x8   :  { %119 = vmatpush.msra.mxu2 %v34_v3  ;;  %45 = vmatpush.msra.mxu0 %v34_v3  ;;  %v25_v21 = vld [vmem:[%s298_s1 + $0x18] sm:$0xff]  ;;  %v73_v22 = vld [vmem:[%s299_s3 + $0x30] sm:$0xff]  ;;  %v72_v24 = vld [vmem:[%s299_s3 + $0x28] sm:$0xff] }
   0x9   :  { %134 = vmatpush.msra.mxu3 %v80_v8  ;;  %89 = vmatpush.msra.mxu1 %v80_v8  ;;  %v24_v23 = vld [vmem:[%s298_s1 + $0x10] sm:$0xff]  ;;  %v23_v25 = vld [vmem:[%s298_s1 + $0x8] sm:$0xff]  ;;  %v22_v26 = vld [vmem:[%s298_s1] sm:$0xff] }
   0xa   :  { %120 = vmatpush.msra.mxu2 %v33_v4  ;;  %46 = vmatpush.msra.mxu0 %v33_v4  ;;  %v21_v27 = vld [vmem:[%s301_s0 + $0x8] sm:$0xff]  ;;  %v20_v28 = vld [vmem:[%s301_s0] sm:$0xff]  ;;  %v70_v30 = vld [vmem:[%s299_s3 + $0x18] sm:$0xff] }
   0xb   :  { %135 = vmatpush.msra.mxu3 %v79_v10  ;;  %90 = vmatpush.msra.mxu1 %v79_v10  ;;  %v71_v29 = vld [vmem:[%s299_s3 + $0x20] sm:$0xff]  ;;  %v69_v31 = vld [vmem:[%s299_s3 + $0x10] sm:$0xff]  ;;  %v68_v32 = vld [vmem:[%s299_s3 + $0x8] sm:$0xff] }
   0xc   :  { %121 = vmatpush.msra.mxu2 %v32_v7  ;;  %47 = vmatpush.msra.mxu0 %v32_v7  ;;  %v67_v33 = vld [vmem:[%s299_s3] sm:$0xff] }
   0xd   :  { %136 = vmatpush.msra.mxu3 %v78_v12  ;;  %91 = vmatpush.msra.mxu1 %v78_v12  ;;  %v148_v34 = vld [vmem:[%s300_s2] ss:$0 sm:$0xff] }
   0xe   :  { %122 = vmatpush.msra.mxu2 %v31_v9  ;;  %48 = vmatpush.msra.mxu0 %v31_v9  ;;  %v149_v41 = vld [vmem:[%s302_s4] ss:$0 sm:$0xff] }
   0xf   :  { %137 = vmatpush.msra.mxu3 %v77_v14  ;;  %92 = vmatpush.msra.mxu1 %v77_v14 }
  0x10   :  { %123 = vmatpush.msra.mxu2 %v30_v11  ;;  %49 = vmatpush.msra.mxu0 %v30_v11 }
  0x11   :  { %138 = vmatpush.msra.mxu3 %v76_v16  ;;  %93 = vmatpush.msra.mxu1 %v76_v16 }
  0x12   :  { %124 = vmatpush.msra.mxu2 %v29_v13  ;;  %50 = vmatpush.msra.mxu0 %v29_v13 }
  0x13   :  { %139 = vmatpush.msra.mxu3 %v75_v18  ;;  %94 = vmatpush.msra.mxu1 %v75_v18 }
  0x14   :  { %125 = vmatpush.msra.mxu2 %v28_v15  ;;  %51 = vmatpush.msra.mxu0 %v28_v15 }
  0x15   :  { %140 = vmatpush.msra.mxu3 %v74_v20  ;;  %95 = vmatpush.msra.mxu1 %v74_v20 }
  0x16   :  { %126 = vmatpush.msra.mxu2 %v27_v17  ;;  %52 = vmatpush.msra.mxu0 %v27_v17 }
  0x17   :  { %141 = vmatpush.msra.mxu3 %v73_v22  ;;  %96 = vmatpush.msra.mxu1 %v73_v22 }
  0x18   :  { %127 = vmatpush.msra.mxu2 %v26_v19  ;;  %53 = vmatpush.msra.mxu0 %v26_v19 }
  0x19   :  { %142 = vmatpush.msra.mxu3 %v72_v24  ;;  %97 = vmatpush.msra.mxu1 %v72_v24 }
  0x1a   :  { %128 = vmatpush.msra.mxu2 %v25_v21  ;;  %54 = vmatpush.msra.mxu0 %v25_v21 }
  0x1b   :  { %143 = vmatpush.msra.mxu3 %v71_v29  ;;  %98 = vmatpush.msra.mxu1 %v71_v29 }
  0x1c   :  { %129 = vmatpush.msra.mxu2 %v24_v23  ;;  %55 = vmatpush.msra.mxu0 %v24_v23 }
  0x1d   :  { %144 = vmatpush.msra.mxu3 %v70_v30  ;;  %99 = vmatpush.msra.mxu1 %v70_v30 }
  0x1e   :  { %130 = vmatpush.msra.mxu2 %v23_v25  ;;  %56 = vmatpush.msra.mxu0 %v23_v25 }
  0x1f   :  { %145 = vmatpush.msra.mxu3 %v69_v31  ;;  %100 = vmatpush.msra.mxu1 %v69_v31 }
  0x20   :  { %131 = vmatpush.msra.mxu2 %v22_v26  ;;  %57 = vmatpush.msra.mxu0 %v22_v26 }
  0x21   :  { %61 = vmatmul.f32.vlgmr.msra.gmra.mxu2 %v21_v27  ;;  %58 = vmatmul.f32.vlgmr.msra.gmra.mxu0 %v20_v28 }
  0x22   :  { %146 = vmatpush.msra.mxu3 %v68_v32  ;;  %101 = vmatpush.msra.mxu1 %v68_v32 }
  0x24   :  { %147 = vmatpush.msra.mxu3 %v67_v33  ;;  %102 = vmatpush.msra.mxu1 %v67_v33 }
  0x9e   :  { %v59_v35 = vpop.f32.mrf.mxu0 }
  0x9f   :  { %v60_v36 = vadd.f32 %v148_v34, %v59_v35 }
  0xa1   :  { %150 = vtanh.f32 %v60_v36 }
  0xa4   :  { %v62_v37 = vpop.f32.mrf.mxu2 }
  0xa5   :  { %v63_v38 = vadd.f32 %v148_v34, %v62_v37 }
  0xa7   :  { %v151_v39 = vpop.eup %150  ;;  %152 = vtanh.f32 %v63_v38 }
  0xa8   :  { %103 = vmatmul.f32.vlgmr.msra.gmra.mxu1 %v151_v39 }
  0xad   :  { %v153_v40 = vpop.eup %152 }
  0xae   :  { %106 = vmatmul.f32.vlgmr.msra.gmra.mxu3 %v153_v40 }
 0x125   :  { %v104_v42 = vpop.f32.mrf.mxu1 }
 0x126   :  { %v105_v43 = vadd.f32 %v149_v41, %v104_v42 }
 0x128   :  { %110 = vst [vmem:[%s303_s5] sm:$0xff] %v105_v43 }
 0x131   :  { %v107_v44 = vpop.f32.mrf.mxu3 }
 0x132   :  { %v108_v45 = vadd.f32 %v149_v41, %v107_v44 }
 0x134   :  { %111 = vst [vmem:[%s303_s5 + $0x8] sm:$0xff] %v108_v45 }

</bundles_post_ra>
